<compile_context>
chip_gen: v5e
topology: v5e:2x2
jax: 0.10.0
libtpu: 0.0.40
codegen_flags: <defaults>
</compile_context>

<pallas_src>
import functools

import jax
import jax.numpy as jnp
from jax.experimental import pallas as pl
from jax.experimental.pallas import tpu as pltpu

HIDDEN_SIZE = 64
OUTPUT_SIZE = 1


def _round_up(n, m):
    return ((n + m - 1) // m) * m


def _branch_kernel(x_ref, w1_ref, w2_ref, w3_ref, w4_ref, w5_ref, b_ref,
                   o_ref, *, out_sizes, compute_dtype):
    """Fused 5-layer MLP in transposed (batch-on-lanes) layout.

    x_ref : (input_size, tile_b)  activations, batch on the lane axis
    wi_ref: (out_i, in_i)         weights, PyTorch (out, in) layout
    b_ref : (pad, 1)              all biases packed along sublanes (f32)
    o_ref : (1, tile_b)           lane-dense output block
    """
    w_refs = (w1_ref, w2_ref, w3_ref, w4_ref, w5_ref)
    n_layers = len(w_refs)

    h = x_ref[...].astype(compute_dtype)        # (in, tile_b)
    b_all = b_ref[...]                          # (pad, 1) f32

    off = 0
    for li, (w_ref, n_out) in enumerate(zip(w_refs, out_sizes)):
        z = jnp.dot(w_ref[...].astype(compute_dtype), h,
                    preferred_element_type=jnp.float32)   # (n_out, tile_b) f32
        z = z + b_all[off:off + n_out, :]                  # bias add in f32
        off += n_out
        if li < n_layers - 1:
            h = jnp.tanh(z).astype(compute_dtype)          # tanh on EUP
        else:
            h = z                                          # fc5: no activation
    o_ref[...] = h.astype(o_ref.dtype)


def branch_network_forward(x, params, *, tile_b=512,
                           compute_dtype=jnp.float32):
    """BranchNetwork forward pass via one fused Pallas kernel.

    x:       (B, input_size) float32
    params:  dict with w1..w5 of shape (out, in) and b1..b5 of shape (out,)
    returns: (B, 1) float32
    """
    B, input_size = x.shape
    out_sizes = tuple(params[f"w{i}"].shape[0] for i in range(1, 6))

    # Effective batch tile: multiple of 128 lanes (lane-dense), capped near B.
    tb = _round_up(min(tile_b, max(B, 128)), 128)
    Bp = _round_up(B, tb)

    # Transpose so batch is on the lane axis; zero-pad batch to Bp.
    xt = x.T.astype(compute_dtype)                       # (input_size, B)
    if Bp != B:
        xt = jnp.pad(xt, ((0, 0), (0, Bp - B)))

    weights = [params[f"w{i}"].astype(compute_dtype) for i in range(1, 6)]

    # Pack all biases along the sublane axis into one small f32 buffer.
    b_cat = jnp.concatenate([params[f"b{i}"].reshape(-1).astype(jnp.float32)
                             for i in range(1, 6)])
    b_pad = _round_up(int(b_cat.shape[0]), 8)
    b_packed = jnp.pad(b_cat, (0, b_pad - b_cat.shape[0])).reshape(b_pad, 1)

    grid = (Bp // tb,)

    def _full(arr):
        return pl.BlockSpec(arr.shape, lambda i: (0, 0))

    kernel = functools.partial(_branch_kernel, out_sizes=out_sizes,
                               compute_dtype=compute_dtype)

    out = pl.pallas_call(
        kernel,
        out_shape=jax.ShapeDtypeStruct((1, Bp), jnp.float32),
        grid_spec=pltpu.PrefetchScalarGridSpec(
            num_scalar_prefetch=0,
            grid=grid,
            in_specs=[pl.BlockSpec((input_size, tb), lambda i: (0, i))]
                     + [_full(w) for w in weights]
                     + [_full(b_packed)],
            out_specs=pl.BlockSpec((1, tb), lambda i: (0, i)),
        ),
        compiler_params=pltpu.CompilerParams(
            dimension_semantics=("parallel",),
            vmem_limit_bytes=32 * 1024 * 1024,
        ),
    )(xt, *weights, b_packed)

    return out[:, :B].T                                   # (B, 1) f32


def init_params(input_size, hidden_size, output_size, seed=0):
    """Deterministic init, PyTorch nn.Linear layout: w (out, in), b (out,)."""
    key = jax.random.PRNGKey(seed)
    sizes = [
        (hidden_size, input_size),
        (hidden_size // 2, hidden_size),
        (hidden_size // 4, hidden_size // 2),
        (hidden_size // 8, hidden_size // 4),
        (output_size, hidden_size // 8),
    ]
    params = {}
    for idx, (fan_out, fan_in) in enumerate(sizes, start=1):
        key, kw, kb = jax.random.split(key, 3)
        bound = float(fan_in) ** -0.5
        params[f"w{idx}"] = jax.random.uniform(
            kw, (fan_out, fan_in), jnp.float32, minval=-bound, maxval=bound)
        params[f"b{idx}"] = jax.random.uniform(
            kb, (fan_out,), jnp.float32, minval=-bound, maxval=bound)
    return params


def reference_forward(x, params):
    """Pure-JAX reference matching the PyTorch module semantics."""
    h = jnp.tanh(x @ params["w1"].T + params["b1"])
    h = jnp.tanh(h @ params["w2"].T + params["b2"])
    h = jnp.tanh(h @ params["w3"].T + params["b3"])
    h = jnp.tanh(h @ params["w4"].T + params["b4"])
    return h @ params["w5"].T + params["b5"]


if __name__ == "__main__":
    input_size = 16
    small_batch = 8          # small shape check (pads to one 128-lane tile)
    big_batch = 256          # exercises grid=(2,) with 128-wide tiles

    params = init_params(input_size, HIDDEN_SIZE, OUTPUT_SIZE, seed=0)
    key = jax.random.PRNGKey(0)
    x_small = jax.random.normal(key, (small_batch, input_size), jnp.float32)
    x_big = jax.random.normal(key, (big_batch, input_size), jnp.float32)

    # f32 compute path: tight correctness check at the small shape.
    y_ref_small = reference_forward(x_small, params)
    y_small = jax.block_until_ready(
        branch_network_forward(x_small, params, compute_dtype=jnp.float32))
    assert y_small.shape == (small_batch, OUTPUT_SIZE)
    assert jnp.allclose(y_small, y_ref_small, atol=1e-4, rtol=1e-4), \
        "f32 kernel mismatch vs reference (small batch)"

    # Multi-tile path (grid > 1), 128-lane tiles.
    y_ref_big = reference_forward(x_big, params)
    y_big = jax.block_until_ready(
        branch_network_forward(x_big, params, tile_b=128,
                               compute_dtype=jnp.float32))
    assert y_big.shape == (big_batch, OUTPUT_SIZE)
    assert jnp.allclose(y_big, y_ref_big, atol=1e-4, rtol=1e-4), \
        "f32 kernel mismatch vs reference (multi-tile)"

    # bf16 MXU-input path (v6e/v7x perf mode): loose sanity check.
    y16 = jax.block_until_ready(
        branch_network_forward(x_big, params, tile_b=128,
                               compute_dtype=jnp.bfloat16))
    assert jnp.allclose(y16, y_ref_big, atol=1e-1, rtol=1e-1), \
        "bf16 kernel mismatch vs reference"

    print("KERNEL_OK")
</pallas_src>

<mosaic_0001>
module attributes {stable_mosaic.version = 11 : i64} {
  func.func @_branch_kernel(%arg0: i32, %arg1: memref<16x128xf32, #tpu.memory_space<vmem>>, %arg2: memref<64x16xf32, #tpu.memory_space<vmem>>, %arg3: memref<32x64xf32, #tpu.memory_space<vmem>>, %arg4: memref<16x32xf32, #tpu.memory_space<vmem>>, %arg5: memref<8x16xf32, #tpu.memory_space<vmem>>, %arg6: memref<1x8xf32, #tpu.memory_space<vmem>>, %arg7: memref<128x1xf32, #tpu.memory_space<vmem>>, %arg8: memref<1x128xf32, #tpu.memory_space<vmem>>) attributes {dimension_semantics = [#tpu.dimension_semantics<parallel>], iteration_bounds = array<i64: 1>, scalar_prefetch = 0 : i64, scratch_operands = 0 : i64, tpu.core_type = #tpu.core_type<tc>, window_params = [{transform_indices = @transform_0, window_bounds = array<i64: 16, 128>}, {pipeline_mode = #tpu.pipeline_mode<synchronous>, transform_indices = @transform_1, window_bounds = array<i64: 64, 16>}, {pipeline_mode = #tpu.pipeline_mode<synchronous>, transform_indices = @transform_2, window_bounds = array<i64: 32, 64>}, {pipeline_mode = #tpu.pipeline_mode<synchronous>, transform_indices = @transform_3, window_bounds = array<i64: 16, 32>}, {pipeline_mode = #tpu.pipeline_mode<synchronous>, transform_indices = @transform_4, window_bounds = array<i64: 8, 16>}, {pipeline_mode = #tpu.pipeline_mode<synchronous>, transform_indices = @transform_5, window_bounds = array<i64: 1, 8>}, {pipeline_mode = #tpu.pipeline_mode<synchronous>, transform_indices = @transform_6, window_bounds = array<i64: 128, 1>}, {transform_indices = @transform_7, window_bounds = array<i64: 1, 128>}]} {
    %c0 = arith.constant 0 : index
    %c0_0 = arith.constant 0 : index
    %0 = vector.load %arg1[%c0, %c0_0] : memref<16x128xf32, #tpu.memory_space<vmem>>, vector<16x128xf32>
    %c0_1 = arith.constant 0 : index
    %c0_2 = arith.constant 0 : index
    %1 = vector.load %arg7[%c0_1, %c0_2] : memref<128x1xf32, #tpu.memory_space<vmem>>, vector<128x1xf32>
    %c0_3 = arith.constant 0 : index
    %c0_4 = arith.constant 0 : index
    %2 = vector.load %arg2[%c0_3, %c0_4] : memref<64x16xf32, #tpu.memory_space<vmem>>, vector<64x16xf32>
    %cst = arith.constant dense<0.000000e+00> : vector<64x128xf32>
    %3 = tpu.matmul %2, %0, %cst {dimension_numbers = #tpu.dot_dimension_numbers<[1], [0], [0], [1], [0, 0, 1, 1], [], []>} : vector<64x16xf32>, vector<16x128xf32>, vector<64x128xf32> -> vector<64x128xf32>
    %4 = vector.extract_strided_slice %1 {offsets = [0, 0], sizes = [64, 1], strides = [1, 1]} : vector<128x1xf32> to vector<64x1xf32>
    %5 = vector.broadcast %4 : vector<64x1xf32> to vector<64x128xf32>
    %6 = arith.addf %3, %5 : vector<64x128xf32>
    %7 = math.tanh %6 : vector<64x128xf32>
    %c0_5 = arith.constant 0 : index
    %c0_6 = arith.constant 0 : index
    %8 = vector.load %arg3[%c0_5, %c0_6] : memref<32x64xf32, #tpu.memory_space<vmem>>, vector<32x64xf32>
    %cst_7 = arith.constant dense<0.000000e+00> : vector<32x128xf32>
    %9 = tpu.matmul %8, %7, %cst_7 {dimension_numbers = #tpu.dot_dimension_numbers<[1], [0], [0], [1], [0, 0, 1, 1], [], []>} : vector<32x64xf32>, vector<64x128xf32>, vector<32x128xf32> -> vector<32x128xf32>
    %10 = vector.extract_strided_slice %1 {offsets = [64, 0], sizes = [32, 1], strides = [1, 1]} : vector<128x1xf32> to vector<32x1xf32>
    %11 = vector.broadcast %10 : vector<32x1xf32> to vector<32x128xf32>
    %12 = arith.addf %9, %11 : vector<32x128xf32>
    %13 = math.tanh %12 : vector<32x128xf32>
    %c0_8 = arith.constant 0 : index
    %c0_9 = arith.constant 0 : index
    %14 = vector.load %arg4[%c0_8, %c0_9] : memref<16x32xf32, #tpu.memory_space<vmem>>, vector<16x32xf32>
    %cst_10 = arith.constant dense<0.000000e+00> : vector<16x128xf32>
    %15 = tpu.matmul %14, %13, %cst_10 {dimension_numbers = #tpu.dot_dimension_numbers<[1], [0], [0], [1], [0, 0, 1, 1], [], []>} : vector<16x32xf32>, vector<32x128xf32>, vector<16x128xf32> -> vector<16x128xf32>
    %16 = vector.extract_strided_slice %1 {offsets = [96, 0], sizes = [16, 1], strides = [1, 1]} : vector<128x1xf32> to vector<16x1xf32>
    %17 = vector.broadcast %16 : vector<16x1xf32> to vector<16x128xf32>
    %18 = arith.addf %15, %17 : vector<16x128xf32>
    %19 = math.tanh %18 : vector<16x128xf32>
    %c0_11 = arith.constant 0 : index
    %c0_12 = arith.constant 0 : index
    %20 = vector.load %arg5[%c0_11, %c0_12] : memref<8x16xf32, #tpu.memory_space<vmem>>, vector<8x16xf32>
    %cst_13 = arith.constant dense<0.000000e+00> : vector<8x128xf32>
    %21 = tpu.matmul %20, %19, %cst_13 {dimension_numbers = #tpu.dot_dimension_numbers<[1], [0], [0], [1], [0, 0, 1, 1], [], []>} : vector<8x16xf32>, vector<16x128xf32>, vector<8x128xf32> -> vector<8x128xf32>
    %22 = vector.extract_strided_slice %1 {offsets = [112, 0], sizes = [8, 1], strides = [1, 1]} : vector<128x1xf32> to vector<8x1xf32>
    %23 = vector.broadcast %22 : vector<8x1xf32> to vector<8x128xf32>
    %24 = arith.addf %21, %23 : vector<8x128xf32>
    %25 = math.tanh %24 : vector<8x128xf32>
    %c0_14 = arith.constant 0 : index
    %c0_15 = arith.constant 0 : index
    %26 = vector.load %arg6[%c0_14, %c0_15] : memref<1x8xf32, #tpu.memory_space<vmem>>, vector<1x8xf32>
    %cst_16 = arith.constant dense<0.000000e+00> : vector<1x128xf32>
    %27 = tpu.matmul %26, %25, %cst_16 {dimension_numbers = #tpu.dot_dimension_numbers<[1], [0], [0], [1], [0, 0, 1, 1], [], []>} : vector<1x8xf32>, vector<8x128xf32>, vector<1x128xf32> -> vector<1x128xf32>
    %28 = vector.extract_strided_slice %1 {offsets = [120, 0], sizes = [1, 1], strides = [1, 1]} : vector<128x1xf32> to vector<1x1xf32>
    %29 = vector.broadcast %28 : vector<1x1xf32> to vector<1x128xf32>
    %30 = arith.addf %27, %29 : vector<1x128xf32>
    %c0_17 = arith.constant 0 : index
    %c0_18 = arith.constant 0 : index
    %31 = vector.load %arg8[%c0_17, %c0_18] : memref<1x128xf32, #tpu.memory_space<vmem>>, vector<1x128xf32>
    tpu.vector_store %arg8[%c0_17, %c0_18], %30 {strides = array<i32>} : memref<1x128xf32, #tpu.memory_space<vmem>>, vector<1x128xf32>,
    return
  }
  func.func @transform_0(%arg0: i32) -> (i32, i32) {
    %c0_i32 = arith.constant 0 : i32
    %c0_i32_0 = arith.constant 0 : i32
    return %c0_i32, %arg0 : i32, i32
  }
  func.func @transform_1(%arg0: i32) -> (i32, i32) {
    %c0_i32 = arith.constant 0 : i32
    %c0_i32_0 = arith.constant 0 : i32
    %c0_i32_1 = arith.constant 0 : i32
    return %c0_i32, %c0_i32_0 : i32, i32
  }
  func.func @transform_2(%arg0: i32) -> (i32, i32) {
    %c0_i32 = arith.constant 0 : i32
    %c0_i32_0 = arith.constant 0 : i32
    %c0_i32_1 = arith.constant 0 : i32
    return %c0_i32, %c0_i32_0 : i32, i32
  }
  func.func @transform_3(%arg0: i32) -> (i32, i32) {
    %c0_i32 = arith.constant 0 : i32
    %c0_i32_0 = arith.constant 0 : i32
    %c0_i32_1 = arith.constant 0 : i32
    return %c0_i32, %c0_i32_0 : i32, i32
  }
  func.func @transform_4(%arg0: i32) -> (i32, i32) {
    %c0_i32 = arith.constant 0 : i32
    %c0_i32_0 = arith.constant 0 : i32
    %c0_i32_1 = arith.constant 0 : i32
    return %c0_i32, %c0_i32_0 : i32, i32
  }
  func.func @transform_5(%arg0: i32) -> (i32, i32) {
    %c0_i32 = arith.constant 0 : i32
    %c0_i32_0 = arith.constant 0 : i32
    %c0_i32_1 = arith.constant 0 : i32
    return %c0_i32, %c0_i32_0 : i32, i32
  }
  func.func @transform_6(%arg0: i32) -> (i32, i32) {
    %c0_i32 = arith.constant 0 : i32
    %c0_i32_0 = arith.constant 0 : i32
    %c0_i32_1 = arith.constant 0 : i32
    return %c0_i32, %c0_i32_0 : i32, i32
  }
  func.func @transform_7(%arg0: i32) -> (i32, i32) {
    %c0_i32 = arith.constant 0 : i32
    %c0_i32_0 = arith.constant 0 : i32
    return %c0_i32, %arg0 : i32, i32
  }
}

</mosaic_0001>

<bundles_post_ra>
// kernel: tpu_custom_call.1
= control target key start
LH: loop header
LB: loop body
LE: loop exit
PB: predicated region body
PF: predicated region fallthrough
CT: control target
= control target key end

     0   :  { %v437_v3 = vmov 0   ;;  %vm93_vm0 = vcmask 130048   ;;  %s593_s0 = inlined_call_operand.vmem [shape: f32[16,128], index: 0, kind: input, shape index: {}]   ;;  %s594_s1 = inlined_call_operand.vmem [shape: f32[64,16], index: 1, kind: input, shape index: {}]   ;;  %s595_s2 = inlined_call_operand.vmem [shape: f32[32,64], index: 2, kind: input, shape index: {}]   ;;  %s596_s3 = inlined_call_operand.vmem [shape: f32[16,32], index: 3, kind: input, shape index: {}]   ;;  %s597_s4 = inlined_call_operand.vmem [shape: f32[8,16], index: 4, kind: input, shape index: {}]   ;;  %s598_s5 = inlined_call_operand.vmem [shape: f32[1,8], index: 5, kind: input, shape index: {}]   ;;  %s599_s6 = inlined_call_operand.vmem [shape: f32[128,1], index: 6, kind: input, shape index: {}]   ;;  %s600_s7 = inlined_call_operand.hbm [shape: f32[1,128], index: 7, kind: output, shape index: {}]  }
   0x1   :  { %v28_v0 = vld [vmem:[%s593_s0 + $0x8] sm:$0xff]  ;;  %v36_v1 = vld [vmem:[%s599_s6 + $0x38] sm:$0xff]  ;;  %379 = vset.pattern.permute.xlu1 %v437_v3  ;;  %378 = vset.pattern.permute.xlu0 %v437_v3  ;;  %v27_v4 = vld [vmem:[%s593_s0] sm:$0xff] }
   0x2   :  { %v34_v2 = vld [vmem:[%s599_s6 + $0x28] sm:$0xff]  ;;  %132 = vmatpush.msra.mxu0 %v28_v0  ;;  %374 = vmatpush.msra.mxu3 %v28_v0  ;;  %v45_v5 = vld [vmem:[%s594_s1] sm:$0xff]  ;;  %v32_v7 = vld [vmem:[%s599_s6 + $0x18] sm:$0xff] }
   0x3   :  { %v50_v6 = vld [vmem:[%s594_s1 + $0x28] sm:$0xff]  ;;  %90 = vperm.xlu0 %378, %v36_v1   ;;  %80 = vperm.xlu1 %379, %v34_v2  }
   0x4   :  { %133 = vmatpush.msra.mxu0 %v27_v4  ;;  %375 = vmatpush.msra.mxu3 %v27_v4 }
   0x5   :  { %358 = vmatmul.msk.f32.vlgmr.msra.gmra.mxu0 %vm93_vm0, %v45_v5  ;;  %363 = vmatmul.msk.f32.vlgmr.msra.gmra.mxu3 %vm93_vm0, %v50_v6 }
   0x6   :  { %380 = vset.pattern.permute.xlu2 %v437_v3 }
   0x7   :  { %70 = vperm.xlu2 %380, %v32_v7  }
   0x8   :  { %12 = vsyncpa [#allocation3], 0  ;;  %v35_v8 = vld [vmem:[%s599_s6 + $0x30] sm:$0xff]  ;;  %v33_v9 = vld [vmem:[%s599_s6 + $0x20] sm:$0xff]  ;;  %vm191_vm1 = vcmask 523264   ;;  %vm249_vm2 = vcmask 261120  }
   0x9   :  { %v46_v10 = vld [vmem:[%s594_s1 + $0x8] sm:$0xff]  ;;  %v51_v11 = vld [vmem:[%s594_s1 + $0x30] sm:$0xff]  ;;  %v29_v14 = vld [vmem:[%s599_s6] sm:$0xff]  ;;  %vm317_vm3 = vcmask 64512   ;;  %s438_s16 = smov [#allocation2]   ;;  %s349_s19 = sshll.u32 %s600_s7, 4  ;;  %s350_s19 = int_to_ptr.hbm [resolvable:$true] %s349_s19 }
   0xa   :  { %v31_v12 = vld [vmem:[%s599_s6 + $0x10] sm:$0xff]  ;;  %v30_v13 = vld [vmem:[%s599_s6 + $0x8] sm:$0xff]  ;;  %v52_v16 = vld [vmem:[%s594_s1 + $0x38] sm:$0xff]  ;;  %s347_s17 = sshll.u32 %s438_s16, 4  ;;  %s348_s17 = int_to_ptr.vmem [resolvable:$true] %s347_s17 }
   0xb   :  { %85 = vperm.xlu0 %378, %v35_v8   ;;  %75 = vperm.xlu1 %379, %v33_v9   ;;  %v47_v15 = vld [vmem:[%s594_s1 + $0x10] sm:$0xff]  ;;  %v40_v17 = vld [vmem:[%s599_s6 + $0x58] sm:$0xff]  ;;  %v38_v19 = vld [vmem:[%s599_s6 + $0x48] sm:$0xff] }
   0xc   :  { %v39_v18 = vld [vmem:[%s599_s6 + $0x50] sm:$0xff]  ;;  %v48_v20 = vld [vmem:[%s594_s1 + $0x18] sm:$0xff]  ;;  %v37_v21 = vld [vmem:[%s599_s6 + $0x40] sm:$0xff] }
   0xd   :  { %359 = vmatmul.msk.f32.gmra.mxu0 %vm93_vm0, %v46_v10  ;;  %364 = vmatmul.msk.f32.gmra.mxu3 %vm93_vm0, %v51_v11  ;;  %v42_v22 = vld [vmem:[%s599_s6 + $0x68] sm:$0xff]  ;;  %v41_v23 = vld [vmem:[%s599_s6 + $0x60] sm:$0xff]  ;;  %v43_v25 = vld [vmem:[%s599_s6 + $0x70] sm:$0xff] }
   0xe   :  { %v49_v24 = vld [vmem:[%s594_s1 + $0x20] sm:$0xff]  ;;  %v44_v26 = vld [vmem:[%s599_s6 + $0x78] sm:$0xff]  ;;  %v168_v60 = vld [vmem:[%s595_s2 + $0x8] sm:$0xff] }
   0xf   :  { %65 = vperm.xlu2 %380, %v31_v12   ;;  %v167_v58 = vld [vmem:[%s595_s2] sm:$0xff]  ;;  %v169_v61 = vld [vmem:[%s595_s2 + $0x10] sm:$0xff]  ;;  %v170_v62 = vld [vmem:[%s595_s2 + $0x18] sm:$0xff] }
  0x13   :  { %60 = vperm.xlu0 %378, %v30_v13   ;;  %55 = vperm.xlu1 %379, %v29_v14   ;;  %v237_v14 = vld [vmem:[%s596_s3] sm:$0xff] }
  0x15   :  { %360 = vmatmul.msk.f32.gmra.mxu0 %vm93_vm0, %v47_v15  ;;  %365 = vmatmul.msk.f32.gmra.mxu3 %vm93_vm0, %v52_v16  ;;  %v238_v16 = vld [vmem:[%s596_s3 + $0x8] sm:$0xff] }
  0x17   :  { %188 = vperm.xlu2 %380, %v40_v17  }
  0x1b   :  { %183 = vperm.xlu0 %378, %v39_v18   ;;  %178 = vperm.xlu1 %379, %v38_v19  }
  0x1d   :  { %361 = vmatmul.msk.f32.gmra.mxu0 %vm93_vm0, %v48_v20 }
  0x1f   :  { %173 = vperm.xlu2 %380, %v37_v21  }
  0x23   :  { %246 = vperm.xlu0 %378, %v42_v22   ;;  %241 = vperm.xlu1 %379, %v41_v23  }
  0x25   :  { %362 = vmatmul.msk.f32.gmra.mxu0 %vm93_vm0, %v49_v24  ;;  %v281_v24 = vld [vmem:[%s597_s4] sm:$0xff] }
  0x27   :  { %284 = vperm.xlu2 %380, %v43_v25  }
  0x2b   :  { %314 = vperm.xlu0 %378, %v44_v26  }
  0x61   :  { %v71_v38 = vpop.permute.xlu2 %70 }
  0x69   :  { %v66_v47 = vpop.permute.xlu2 %65 }
  0x71   :  { %v189_v2 = vpop.permute.xlu2 %188 }
  0x75   :  { %v91_v30 = vpop.permute.xlu0 %90  ;;  %v81_v32 = vpop.permute.xlu1 %80 }
  0x79   :  { %v174_v9 = vpop.permute.xlu2 %173 }
  0x7d   :  { %v86_v34 = vpop.permute.xlu0 %85  ;;  %v76_v41 = vpop.permute.xlu1 %75 }
  0x81   :  { %v285_v26 = vpop.permute.xlu2 %284 }
  0x82   :  { %v135_v27 = vpop.f32.mrf.mxu0 }
  0x85   :  { %v61_v50 = vpop.permute.xlu0 %60  ;;  %v56_v51 = vpop.permute.xlu1 %55 }
  0x86   :  { %v136_v53 = vadd.f32 %v135_v27, %v56_v51 }
  0x88   :  { %v150_v28 = vpop.f32.mrf.mxu3 }
  0x89   :  { %v151_v40 = vadd.f32 %v150_v28, %v81_v32 }
  0x8a   :  { %v138_v29 = vpop.f32.mrf.mxu0 }
  0x8b   :  { %v139_v52 = vadd.f32 %v138_v29, %v61_v50  ;;  %v311_v29 = vld [vmem:[%s598_s5] sm:$0x1] }
  0x8d   :  { %v184_v3 = vpop.permute.xlu0 %183  ;;  %v179_v7 = vpop.permute.xlu1 %178 }
  0x90   :  { %v153_v31 = vpop.f32.mrf.mxu3 }
  0x91   :  { %v154_v36 = vadd.f32 %v153_v31, %v86_v34 }
  0x92   :  { %v141_v33 = vpop.f32.mrf.mxu0 }
  0x93   :  { %v142_v49 = vadd.f32 %v141_v33, %v66_v47 }
  0x95   :  { %v247_v18 = vpop.permute.xlu0 %246  ;;  %v242_v19 = vpop.permute.xlu1 %241 }
  0x98   :  { %v156_v35 = vpop.f32.mrf.mxu3 }
  0x99   :  { %v157_v37 = vadd.f32 %v156_v35, %v91_v30 }
  0x9a   :  { %v144_v39 = vpop.f32.mrf.mxu0 }
  0x9b   :  { %381 = vtanh.f32 %v157_v37  ;;  %v145_v45 = vadd.f32 %v144_v39, %v71_v38 }
  0x9c   :  { %383 = vtanh.f32 %v154_v36 }
  0x9d   :  { %385 = vtanh.f32 %v151_v40  ;;  %v315_v31 = vpop.permute.xlu0 %314 }
  0xa1   :  { %v382_v42 = vpop.eup %381 }
  0xa2   :  { %v147_v43 = vpop.f32.mrf.mxu0  ;;  %212 = vmatpush.msra.mxu1 %v382_v42  ;;  %v384_v44 = vpop.eup %383 }
  0xa3   :  { %v148_v46 = vadd.f32 %v147_v43, %v76_v41  ;;  %v386_v48 = vpop.eup %385 }
  0xa4   :  { %213 = vmatpush.msra.mxu1 %v384_v44 }
  0xa5   :  { %387 = vtanh.f32 %v148_v46 }
  0xa6   :  { %214 = vmatpush.msra.mxu1 %v386_v48  ;;  %389 = vtanh.f32 %v145_v45 }
  0xa7   :  { %391 = vtanh.f32 %v142_v49 }
  0xa8   :  { %393 = vtanh.f32 %v139_v52 }
  0xa9   :  { %395 = vtanh.f32 %v136_v53 }
  0xab   :  { %v388_v54 = vpop.eup %387 }
  0xac   :  { %215 = vmatpush.msra.mxu1 %v388_v54  ;;  %v390_v55 = vpop.eup %389 }
  0xad   :  { %v392_v56 = vpop.eup %391 }
  0xae   :  { %216 = vmatpush.msra.mxu1 %v390_v55  ;;  %v394_v57 = vpop.eup %393 }
  0xaf   :  { %v396_v59 = vpop.eup %395 }
  0xb0   :  { %217 = vmatpush.msra.mxu1 %v392_v56 }
  0xb2   :  { %218 = vmatpush.msra.mxu1 %v394_v57 }
  0xb4   :  { %219 = vmatpush.msra.mxu1 %v396_v59 }
  0xb5   :  { %366 = vmatmul.msk.f32.vlgmr.msra.gmra.mxu1 %vm191_vm1, %v167_v58 }
  0xbd   :  { %367 = vmatmul.msk.f32.gmra.mxu1 %vm191_vm1, %v168_v60 }
  0xc5   :  { %368 = vmatmul.msk.f32.gmra.mxu1 %vm191_vm1, %v169_v61 }
  0xcd   :  { %369 = vmatmul.msk.f32.gmra.mxu1 %vm191_vm1, %v170_v62 }
 0x132   :  { %v221_v63 = vpop.f32.mrf.mxu1 }
 0x133   :  { %v222_v10 = vadd.f32 %v221_v63, %v174_v9 }
 0x13a   :  { %v224_v0 = vpop.f32.mrf.mxu1 }
 0x13b   :  { %v225_v8 = vadd.f32 %v224_v0, %v179_v7 }
 0x142   :  { %v227_v1 = vpop.f32.mrf.mxu1 }
 0x143   :  { %v228_v5 = vadd.f32 %v227_v1, %v184_v3 }
 0x14a   :  { %v230_v4 = vpop.f32.mrf.mxu1 }
 0x14b   :  { %v231_v6 = vadd.f32 %v230_v4, %v189_v2 }
 0x14d   :  { %397 = vtanh.f32 %v231_v6 }
 0x14e   :  { %399 = vtanh.f32 %v228_v5 }
 0x14f   :  { %401 = vtanh.f32 %v225_v8 }
 0x150   :  { %403 = vtanh.f32 %v222_v10 }
 0x153   :  { %v398_v11 = vpop.eup %397 }
 0x154   :  { %268 = vmatpush.msra.mxu2 %v398_v11  ;;  %v400_v12 = vpop.eup %399 }
 0x155   :  { %v402_v13 = vpop.eup %401 }
 0x156   :  { %269 = vmatpush.msra.mxu2 %v400_v12  ;;  %v404_v15 = vpop.eup %403 }
 0x158   :  { %270 = vmatpush.msra.mxu2 %v402_v13 }
 0x15a   :  { %271 = vmatpush.msra.mxu2 %v404_v15 }
 0x15b   :  { %370 = vmatmul.msk.f32.vlgmr.msra.gmra.mxu2 %vm249_vm2, %v237_v14 }
 0x163   :  { %371 = vmatmul.msk.f32.gmra.mxu2 %vm249_vm2, %v238_v16 }
 0x1de   :  { %v273_v17 = vpop.f32.mrf.mxu2 }
 0x1df   :  { %v274_v21 = vadd.f32 %v273_v17, %v242_v19 }
 0x1e6   :  { %v276_v20 = vpop.f32.mrf.mxu2 }
 0x1e7   :  { %v277_v22 = vadd.f32 %v276_v20, %v247_v18 }
 0x1e9   :  { %405 = vtanh.f32 %v277_v22 }
 0x1ea   :  { %407 = vtanh.f32 %v274_v21 }
 0x1ef   :  { %v406_v23 = vpop.eup %405 }
 0x1f0   :  { %304 = vmatpush.msrb.mxu3 %v406_v23  ;;  %v408_v25 = vpop.eup %407 }
 0x1f2   :  { %305 = vmatpush.msrb.mxu3 %v408_v25 }
 0x1f3   :  { %372 = vmatmul.msk.f32.vlgmr.msrb.gmra.mxu3 %vm93_vm0, %v281_v24 }
 0x276   :  { %v307_v27 = vpop.f32.mrf.mxu3 }
 0x277   :  { %v308_v28 = vadd.f32 %v307_v27, %v285_v26 }
 0x279   :  { %409 = vtanh.f32 %v308_v28 }
 0x27f   :  { %v410_v30 = vpop.eup %409 }
 0x280   :  { %336 = vmatpush.msra.mxu3 %v410_v30 }
 0x281   :  { %373 = vmatmul.msk.f32.vlgmr.msra.gmra.mxu3 %vm317_vm3, %v311_v29 }
 0x304   :  { %v338_v32 = vpop.f32.mrf.mxu3 }
 0x305   :  { %v339_v33 = vadd.f32 %v338_v32, %v315_v31 }
 0x307   :  { %341 = vst [vmem:[#allocation2] sm:$0x1] %v339_v33 }
 0x308   :  { %352 = dma.vmem_to_hbm [thread:$0]  %s348_s17, 16, %s350_s19, [#allocation3]  }
 0x309   :  { %435 = dma.done.wait [#allocation3], 16  }
 0x30a   :  { %436 = vsyncadd [#allocation3], 4294967280 }
 0x30b   :  { %357 = vsyncpa [#allocation3], 1 }

</bundles_post_ra>
